<compile_context>
chip_gen: v6e
topology: v6e:2x2x1
jax: 0.10.0
libtpu: 0.0.40
codegen_flags: <defaults>
</compile_context>

<pallas_src>
import functools

import jax
import jax.numpy as jnp
from jax.experimental import pallas as pl
from jax.experimental.pallas import tpu as pltpu

EPS_BN = 1e-5
TAU = 0.5
PAD = 2                        # fixed by the module (padding=2)
VMEM_LIMIT = 48 * 1024 * 1024  # safe on v5e/v6e (128 MiB) and v7x (64 MiB)


# ----------------------------- Pallas kernels ------------------------------ #

def _fc_bn_relu_kernel(x_ref, w_ref, g_ref, b_ref, o_ref, *, eps, inv_b):
    # Linear (bias dropped: cancelled by BN) + BatchNorm1d(per-feature, batch stats)
    # + ReLU over one column tile.  bf16 matmul, f32 accumulation / stats.
    x = x_ref[...].astype(jnp.bfloat16)
    y = jnp.dot(x, w_ref[...], preferred_element_type=jnp.float32)   # (B, TN)
    mean = jnp.sum(y, axis=0, keepdims=True) * inv_b
    d = y - mean
    var = jnp.sum(d * d, axis=0, keepdims=True) * inv_b              # biased (torch BN)
    yn = d * jax.lax.rsqrt(var + eps)
    o_ref[...] = jnp.maximum(yn * g_ref[...] + b_ref[...], 0.0)


def _convt_bn_relu_kernel(x_ref, wp_ref, wc_ref, wn_ref, g_ref, b_ref, o_ref,
                          *, eps, lin, s, cout, inv_nbn):
    # ConvTranspose1d (K == s + 2*pad) on position-major input (B*Lin, Cin):
    # three matmuls against prev/current/next-position phase weights, fused with
    # per-channel training-mode BatchNorm + ReLU.  Output columns are laid out
    # as r*Cout + co (r = position within the stride block), so the wrapper's
    # reshape to (B*Lout, Cout) is contiguous (free).
    xf = x_ref[...]                                   # (M, Cin) f32
    m, cin = xf.shape

    row = jax.lax.broadcasted_iota(jnp.int32, (m, 1), 0)
    pos = row % lin                                   # position within the batch item
    zrow = jnp.zeros((1, cin), jnp.float32)
    x_prev = jnp.concatenate([zrow, xf[:-1, :]], axis=0)
    x_next = jnp.concatenate([xf[1:, :], zrow], axis=0)
    x_prev = jnp.where(pos == 0, 0.0, x_prev)         # no previous position at l == 0
    x_next = jnp.where(pos == lin - 1, 0.0, x_next)   # no next position at l == Lin-1

    xb = xf.astype(jnp.bfloat16)
    xpb = x_prev.astype(jnp.bfloat16)
    xnb = x_next.astype(jnp.bfloat16)
    y = jnp.dot(xb, wc_ref[...], preferred_element_type=jnp.float32)
    y = y + jnp.dot(xpb, wp_ref[...], preferred_element_type=jnp.float32)
    y = y + jnp.dot(xnb, wn_ref[...], preferred_element_type=jnp.float32)

    # Per-channel BN stats over batch*positions: reduce rows, then the s
    # stride-phase groups (columns r*cout + co), then broadcast back per channel.
    colsum = jnp.sum(y, axis=0, keepdims=True)        # (1, s*cout)
    chsum = colsum[:, 0:cout]
    for r in range(1, s):
        chsum = chsum + colsum[:, r * cout:(r + 1) * cout]
    mean = jnp.concatenate([chsum * inv_nbn] * s, axis=1)   # (1, s*cout)
    d = y - mean
    sqsum = jnp.sum(d * d, axis=0, keepdims=True)
    vsum = sqsum[:, 0:cout]
    for r in range(1, s):
        vsum = vsum + sqsum[:, r * cout:(r + 1) * cout]
    var = jnp.concatenate([vsum * inv_nbn] * s, axis=1)

    yn = d * jax.lax.rsqrt(var + eps)
    o_ref[...] = jnp.maximum(yn * g_ref[...] + b_ref[...], 0.0)


def _fc1_gumbel_kernel(x_ref, wf_ref, bf_ref, u_ref, o_ref, *, tau):
    # Per-batch fc1(hidden->seq_len) + (layout-implicit transpose) + Gumbel-softmax.
    # x_ref block: (1, hidden, C) position-major, so the result is written directly
    # in the module's final (seq_len, n_chars) layout.
    x = x_ref[0].astype(jnp.bfloat16)                 # (hidden, C)
    wf = wf_ref[...]                                  # (S, hidden) bf16
    logits = jnp.dot(wf, x, preferred_element_type=jnp.float32)   # (S, C)
    logits = logits + bf_ref[...]                     # (S, 1) bias, broadcast over C
    g = -jnp.log(-jnp.log(u_ref[0] + 1e-20) + 1e-20)  # Gumbel noise from uniform
    z = (logits + g) * (1.0 / tau)
    z = z - jnp.max(z, axis=-1, keepdims=True)
    e = jnp.exp(z)
    o_ref[0] = e / jnp.sum(e, axis=-1, keepdims=True)


# -------------------------- parameter preparation --------------------------- #

def _phase_weights(w, stride, pad):
    """Split ConvTranspose1d weight (Cin, Cout, K), K == stride + 2*pad, into three
    (Cin, stride*Cout) matrices acting on the previous / current / next input
    position.  Column layout: r*Cout + co."""
    cin, cout, k = w.shape
    assert k == stride + 2 * pad
    r = jnp.arange(stride)

    def taps(k_idx):
        valid = ((k_idx >= 0) & (k_idx < k)).astype(w.dtype)
        sel = w[:, :, jnp.clip(k_idx, 0, k - 1)] * valid[None, None, :]
        return jnp.transpose(sel, (0, 2, 1)).reshape(cin, stride * cout)

    w_cur = taps(r + pad)
    w_prev = taps(r + pad + stride)
    w_next = taps(r + pad - stride)
    return w_prev, w_cur, w_next


def pack_params(p, *, hidden, z_dim, stride, n_chars):
    L0 = hidden // stride ** 2
    f0 = n_chars * stride ** 2
    F = hidden * n_chars

    # fc weight permuted so the kernel output is position-major
    # (output column l*f0 + c holds torch feature c*L0 + l); pre-transposed, bf16.
    w1 = p["W1"].reshape(f0, L0, z_dim).transpose(1, 0, 2).reshape(F, z_dim)
    g1 = p["gamma1"].reshape(f0, L0).T.reshape(F)
    b1 = p["beta1"].reshape(f0, L0).T.reshape(F)

    wp1, wc1, wn1 = _phase_weights(p["Wc1"], stride, PAD)
    wp2, wc2, wn2 = _phase_weights(p["Wc2"], stride, PAD)

    return {
        "w1t": w1.T.astype(jnp.bfloat16),              # (z_dim, F)
        "g1": g1[None, :], "b1": b1[None, :],
        "wp1": wp1.astype(jnp.bfloat16), "wc1": wc1.astype(jnp.bfloat16),
        "wn1": wn1.astype(jnp.bfloat16),
        "gc1": jnp.tile(p["gamma_c1"], stride)[None, :],
        "bc1": jnp.tile(p["beta_c1"], stride)[None, :],
        "wp2": wp2.astype(jnp.bfloat16), "wc2": wc2.astype(jnp.bfloat16),
        "wn2": wn2.astype(jnp.bfloat16),
        "gc2": jnp.tile(p["gamma_c2"], stride)[None, :],
        "bc2": jnp.tile(p["beta_c2"], stride)[None, :],
        "wf": p["Wf"].astype(jnp.bfloat16),            # (seq_len, hidden)
        "bf": p["bf"][:, None],                        # (seq_len, 1)
    }


def init_params(key, *, hidden, z_dim, stride, kernel_size, seq_len, n_chars):
    f0 = n_chars * stride ** 2
    f1 = f0 // stride
    f2 = f1 // stride
    F = hidden * n_chars
    ks = jax.random.split(key, 8)

    def xavier(k, shape, fan_in, fan_out):
        lim = (6.0 / (fan_in + fan_out)) ** 0.5
        return jax.random.uniform(k, shape, jnp.float32, -lim, lim)

    # NOTE: pre-BN biases (Linear b1, ConvTranspose biases) are intentionally omitted:
    # training-mode BatchNorm mean subtraction cancels them exactly.
    return {
        "W1": xavier(ks[0], (F, z_dim), z_dim, F),
        "gamma1": 1.0 + 0.1 * jax.random.normal(ks[1], (F,), jnp.float32),
        "beta1": 0.1 * jax.random.normal(ks[2], (F,), jnp.float32),
        "Wc1": xavier(ks[3], (f0, f1, kernel_size), f1 * kernel_size, f0 * kernel_size),
        "gamma_c1": jnp.ones((f1,), jnp.float32),
        "beta_c1": jnp.zeros((f1,), jnp.float32),
        "Wc2": xavier(ks[4], (f1, f2, kernel_size), f2 * kernel_size, f1 * kernel_size),
        "gamma_c2": jnp.ones((f2,), jnp.float32),
        "beta_c2": jnp.zeros((f2,), jnp.float32),
        "Wf": xavier(ks[5], (seq_len, hidden), hidden, seq_len),
        "bf": jax.random.uniform(ks[6], (seq_len,), jnp.float32, -0.1, 0.1),
    }


# --------------------------------- forward ---------------------------------- #

def _convt_call(x_pm, wp, wc, wn, gamma_t, beta_t, *, lin, s, cout, compiler_params):
    m, cin = x_pm.shape
    n = s * cout
    kern = functools.partial(_convt_bn_relu_kernel, eps=EPS_BN, lin=lin, s=s,
                             cout=cout, inv_nbn=1.0 / (m * s))
    # Single-shot: training-mode BN couples every row; working set is small once the
    # dense unroll / P-matrix are gone (a few MB even at real ProteoGAN sizes).
    return pl.pallas_call(
        kern,
        out_shape=jax.ShapeDtypeStruct((m, n), jnp.float32),
        grid=(1,),
        in_specs=[pl.BlockSpec((m, cin), lambda i: (0, 0)),
                  pl.BlockSpec((cin, n), lambda i: (0, 0)),
                  pl.BlockSpec((cin, n), lambda i: (0, 0)),
                  pl.BlockSpec((cin, n), lambda i: (0, 0)),
                  pl.BlockSpec((1, n), lambda i: (0, 0)),
                  pl.BlockSpec((1, n), lambda i: (0, 0))],
        out_specs=pl.BlockSpec((m, n), lambda i: (0, 0)),
        compiler_params=compiler_params,
    )(x_pm, wp, wc, wn, gamma_t, beta_t)


def generator_bn_before_forward(x, gumbel_u, packed, *, hidden, z_dim, stride,
                                kernel_size, seq_len, n_chars):
    B = x.shape[0]
    s = stride
    L0 = hidden // s ** 2
    f0 = n_chars * s ** 2
    f1 = f0 // s
    f2 = f1 // s
    F = hidden * n_chars
    assert kernel_size == s + 2 * PAD, "module requires Lout == stride * Lin"
    assert f0 * L0 == F

    cp_par = pltpu.CompilerParams(dimension_semantics=("parallel",),
                                  vmem_limit_bytes=VMEM_LIMIT)
    cp_arb = pltpu.CompilerParams(dimension_semantics=("arbitrary",),
                                  vmem_limit_bytes=VMEM_LIMIT)

    # ---- fc_block: Linear + BatchNorm1d + ReLU (column-tiled, per-feature BN). ----
    tn = next((t for t in (512, 256, 128) if F % t == 0), F)
    a = pl.pallas_call(
        functools.partial(_fc_bn_relu_kernel, eps=EPS_BN, inv_b=1.0 / B),
        out_shape=jax.ShapeDtypeStruct((B, F), jnp.float32),
        grid=(F // tn,),
        in_specs=[pl.BlockSpec((B, z_dim), lambda j: (0, 0)),
                  pl.BlockSpec((z_dim, tn), lambda j: (0, j)),
                  pl.BlockSpec((1, tn), lambda j: (0, j)),
                  pl.BlockSpec((1, tn), lambda j: (0, j))],
        out_specs=pl.BlockSpec((B, tn), lambda j: (0, j)),
        compiler_params=cp_par,
    )(x, packed["w1t"], packed["g1"], packed["b1"])
    x0 = a.reshape(B * L0, f0)            # contiguous reshape -> position-major

    # ---- conv_block stage 1: ConvTranspose1d(f0->f1) + BN(f1) + ReLU. ----
    y1 = _convt_call(x0, packed["wp1"], packed["wc1"], packed["wn1"],
                     packed["gc1"], packed["bc1"], lin=L0, s=s, cout=f1,
                     compiler_params=cp_arb)
    L1 = L0 * s
    x1 = y1.reshape(B * L1, f1)           # contiguous reshape

    # ---- conv_block stage 2: ConvTranspose1d(f1->f2) + BN(f2) + ReLU. ----
    y2 = _convt_call(x1, packed["wp2"], packed["wc2"], packed["wn2"],
                     packed["gc2"], packed["bc2"], lin=L1, s=s, cout=f2,
                     compiler_params=cp_arb)
    L2 = L1 * s
    assert L2 == hidden
    x2 = y2.reshape(B, hidden, f2)        # x2[b, t, c] = conv_out[b, c, t]

    # ---- fc1 + transpose + Gumbel-softmax, fused; gridded over batch. ----
    out = pl.pallas_call(
        functools.partial(_fc1_gumbel_kernel, tau=TAU),
        out_shape=jax.ShapeDtypeStruct((B, seq_len, f2), jnp.float32),
        grid=(B,),
        in_specs=[pl.BlockSpec((1, hidden, f2), lambda b: (b, 0, 0)),
                  pl.BlockSpec((seq_len, hidden), lambda b: (0, 0)),
                  pl.BlockSpec((seq_len, 1), lambda b: (0, 0)),
                  pl.BlockSpec((1, seq_len, f2), lambda b: (b, 0, 0))],
        out_specs=pl.BlockSpec((1, seq_len, f2), lambda b: (b, 0, 0)),
        compiler_params=cp_par,
    )(x2, packed["wf"], packed["bf"], gumbel_u)
    return out                             # (B, seq_len, n_chars)


# ----------------------------------- main ----------------------------------- #

if __name__ == "__main__":
    # Small config consistent with the module's structural constraints:
    #   hidden % stride**2 == 0  and  kernel_size == stride + 2*padding(=2)
    # (the real ProteoGAN config stride=8, K=12, pad=2 satisfies the same).
    # B chosen as 8 so every row count is a multiple of the f32 sublane width.
    B, hidden, z_dim, stride, kernel_size, seq_len, n_chars = 8, 32, 16, 2, 6, 8, 5

    key = jax.random.PRNGKey(0)
    kx, ku, kp = jax.random.split(key, 3)

    params = init_params(kp, hidden=hidden, z_dim=z_dim, stride=stride,
                         kernel_size=kernel_size, seq_len=seq_len, n_chars=n_chars)
    packed = pack_params(params, hidden=hidden, z_dim=z_dim, stride=stride,
                         n_chars=n_chars)

    x = jax.random.normal(kx, (B, z_dim), jnp.float32)
    gumbel_u = jax.random.uniform(ku, (B, seq_len, n_chars), jnp.float32,
                                  1e-6, 1.0 - 1e-6)

    fwd = functools.partial(generator_bn_before_forward,
                            hidden=hidden, z_dim=z_dim, stride=stride,
                            kernel_size=kernel_size, seq_len=seq_len,
                            n_chars=n_chars)
    out = jax.block_until_ready(fwd(x, gumbel_u, packed))

    assert out.shape == (B, seq_len, n_chars), out.shape
    assert bool(jnp.all(jnp.isfinite(out)))
    assert bool(jnp.allclose(jnp.sum(out, axis=-1), 1.0, atol=1e-4))
    print("KERNEL_OK")
</pallas_src>

<mosaic_0001>
module attributes {stable_mosaic.version = 11 : i64} {
  func.func @_fc_bn_relu_kernel(%arg0: i32, %arg1: memref<8x16xf32, #tpu.memory_space<vmem>>, %arg2: memref<16x160xbf16, #tpu.memory_space<vmem>>, %arg3: memref<1x160xf32, #tpu.memory_space<vmem>>, %arg4: memref<1x160xf32, #tpu.memory_space<vmem>>, %arg5: memref<8x160xf32, #tpu.memory_space<vmem>>) attributes {dimension_semantics = [#tpu.dimension_semantics<parallel>], iteration_bounds = array<i64: 1>, scalar_prefetch = 0 : i64, scratch_operands = 0 : i64, tpu.core_type = #tpu.core_type<tc>, window_params = [{pipeline_mode = #tpu.pipeline_mode<synchronous>, transform_indices = @transform_0, window_bounds = array<i64: 8, 16>}, {transform_indices = @transform_1, window_bounds = array<i64: 16, 160>}, {transform_indices = @transform_2, window_bounds = array<i64: 1, 160>}, {transform_indices = @transform_3, window_bounds = array<i64: 1, 160>}, {transform_indices = @transform_4, window_bounds = array<i64: 8, 160>}]} {
    %c0 = arith.constant 0 : index
    %c0_0 = arith.constant 0 : index
    %0 = vector.load %arg1[%c0, %c0_0] : memref<8x16xf32, #tpu.memory_space<vmem>>, vector<8x16xf32>
    %1 = arith.truncf %0 : vector<8x16xf32> to vector<8x16xbf16>
    %c0_1 = arith.constant 0 : index
    %c0_2 = arith.constant 0 : index
    %2 = vector.load %arg2[%c0_1, %c0_2] : memref<16x160xbf16, #tpu.memory_space<vmem>>, vector<16x160xbf16>
    %cst = arith.constant dense<0.000000e+00> : vector<8x160xf32>
    %3 = tpu.matmul %1, %2, %cst {dimension_numbers = #tpu.dot_dimension_numbers<[1], [0], [0], [1], [0, 0, 1, 1], [], []>} : vector<8x16xbf16>, vector<16x160xbf16>, vector<8x160xf32> -> vector<8x160xf32>
    %cst_3 = arith.constant dense<0.000000e+00> : vector<160xf32>
    %4 = vector.multi_reduction <add>, %3, %cst_3 [0] : vector<8x160xf32> to vector<160xf32>
    %5 = vector.shape_cast %4 : vector<160xf32> to vector<1x160xf32>
    %cst_4 = arith.constant 1.250000e-01 : f32
    %6 = vector.broadcast %cst_4 : f32 to vector<1x160xf32>
    %7 = arith.mulf %5, %6 : vector<1x160xf32>
    %8 = vector.broadcast %7 : vector<1x160xf32> to vector<8x160xf32>
    %9 = arith.subf %3, %8 : vector<8x160xf32>
    %10 = arith.mulf %9, %9 : vector<8x160xf32>
    %cst_5 = arith.constant dense<0.000000e+00> : vector<160xf32>
    %11 = vector.multi_reduction <add>, %10, %cst_5 [0] : vector<8x160xf32> to vector<160xf32>
    %12 = vector.shape_cast %11 : vector<160xf32> to vector<1x160xf32>
    %cst_6 = arith.constant 1.250000e-01 : f32
    %13 = vector.broadcast %cst_6 : f32 to vector<1x160xf32>
    %14 = arith.mulf %12, %13 : vector<1x160xf32>
    %cst_7 = arith.constant 9.99999974E-6 : f32
    %15 = vector.broadcast %cst_7 : f32 to vector<1x160xf32>
    %16 = arith.addf %14, %15 : vector<1x160xf32>
    %17 = math.rsqrt %16 : vector<1x160xf32>
    %18 = vector.broadcast %17 : vector<1x160xf32> to vector<8x160xf32>
    %19 = arith.mulf %9, %18 : vector<8x160xf32>
    %c0_8 = arith.constant 0 : index
    %c0_9 = arith.constant 0 : index
    %20 = vector.load %arg3[%c0_8, %c0_9] : memref<1x160xf32, #tpu.memory_space<vmem>>, vector<1x160xf32>
    %21 = vector.broadcast %20 : vector<1x160xf32> to vector<8x160xf32>
    %22 = arith.mulf %19, %21 : vector<8x160xf32>
    %c0_10 = arith.constant 0 : index
    %c0_11 = arith.constant 0 : index
    %23 = vector.load %arg4[%c0_10, %c0_11] : memref<1x160xf32, #tpu.memory_space<vmem>>, vector<1x160xf32>
    %24 = vector.broadcast %23 : vector<1x160xf32> to vector<8x160xf32>
    %25 = arith.addf %22, %24 : vector<8x160xf32>
    %cst_12 = arith.constant 0.000000e+00 : f32
    %26 = vector.broadcast %cst_12 : f32 to vector<8x160xf32>
    %27 = arith.maximumf %25, %26 : vector<8x160xf32>
    %c0_13 = arith.constant 0 : index
    %c0_14 = arith.constant 0 : index
    %28 = vector.load %arg5[%c0_13, %c0_14] : memref<8x160xf32, #tpu.memory_space<vmem>>, vector<8x160xf32>
    tpu.vector_store %arg5[%c0_13, %c0_14], %27 {strides = array<i32>} : memref<8x160xf32, #tpu.memory_space<vmem>>, vector<8x160xf32>,
    return
  }
  func.func @transform_0(%arg0: i32) -> (i32, i32) {
    %c0_i32 = arith.constant 0 : i32
    %c0_i32_0 = arith.constant 0 : i32
    %c0_i32_1 = arith.constant 0 : i32
    return %c0_i32, %c0_i32_0 : i32, i32
  }
  func.func @transform_1(%arg0: i32) -> (i32, i32) {
    %c0_i32 = arith.constant 0 : i32
    %c0_i32_0 = arith.constant 0 : i32
    return %c0_i32, %arg0 : i32, i32
  }
  func.func @transform_2(%arg0: i32) -> (i32, i32) {
    %c0_i32 = arith.constant 0 : i32
    %c0_i32_0 = arith.constant 0 : i32
    return %c0_i32, %arg0 : i32, i32
  }
  func.func @transform_3(%arg0: i32) -> (i32, i32) {
    %c0_i32 = arith.constant 0 : i32
    %c0_i32_0 = arith.constant 0 : i32
    return %c0_i32, %arg0 : i32, i32
  }
  func.func @transform_4(%arg0: i32) -> (i32, i32) {
    %c0_i32 = arith.constant 0 : i32
    %c0_i32_0 = arith.constant 0 : i32
    return %c0_i32, %arg0 : i32, i32
  }
}

</mosaic_0001>

<bundles_post_ra>
// kernel: tpu_custom_call.1
= control target key start
LH: loop header
LB: loop body
LE: loop exit
PB: predicated region body
PF: predicated region fallthrough
CT: control target
= control target key end

     0   :  { %9 = vsyncpa [#allocation3], 0  ;;  %s324_s0 = inlined_call_operand.hbm [shape: f32[8,16], index: 0, kind: input, shape index: {}]   ;;  %s325_s1 = inlined_call_operand.hbm [shape: bf16[16,160], index: 1, kind: input, shape index: {}]   ;;  %s326_s2 = inlined_call_operand.vmem [shape: f32[1,160], index: 2, kind: input, shape index: {}]   ;;  %s327_s3 = inlined_call_operand.vmem [shape: f32[1,160], index: 3, kind: input, shape index: {}]   ;;  %s328_s4 = inlined_call_operand.hbm [shape: f32[8,160], index: 4, kind: output, shape index: {}]  }
   0x1   :  { %10 = vsyncpa [#allocation6], 0 }
   0x2   :  { %11 = vsyncpa [#allocation4], 0  ;;  %s275_s15 = smov [#allocation2]   ;;  %s276_s17 = smov [#allocation5]  }
   0x3   :  { %s18_s16 = sshll.u32 %s275_s15, 4  ;;  %s27_s18 = sshll.u32 %s276_s17, 4  ;;  %s19_s16 = int_to_ptr.vmem [resolvable:$true] %s18_s16  ;;  %s28_s18 = int_to_ptr.vmem [resolvable:$true] %s27_s18 }
   0x4   :  { %s217_s19 = scalar_lea.vmem %s19_s16, 128  ;;  %p222_p1 = scmp.lt.s32.totalorder %s19_s16, %s19_s16 }
   0x5   :  { %p218_p0 = scmp.ne.s32.totalorder %s19_s16, %s217_s19  ;;  %p223_p2 = scmp.lt.s32.totalorder %s217_s19, %s217_s19 }
   0x7   :  { %p224_p3 = por %p223_p2, %p222_p1 }
   0x9   :  { %p225_p4 = pnand %p224_p3, %p218_p0 }
   0xb   :  { %228 = shalt.err (!%p225_p4)
}
   0xc   :  { %21 = dma.hbm_to_vmem [thread:$0]  %s324_s0, 128, %s19_s16, [#allocation3]  }
   0xd   :  { %s237_s22 = scalar_lea.vmem %s28_s18, 256  ;;  %p242_p6 = scmp.lt.s32.totalorder %s28_s18, %s28_s18 }
   0xe   :  { %p238_p5 = scmp.ne.s32.totalorder %s28_s18, %s237_s22  ;;  %p243_p7 = scmp.lt.s32.totalorder %s237_s22, %s237_s22 }
  0x10   :  { %p244_p8 = por %p243_p7, %p242_p6 }
  0x12   :  { %p245_p9 = pnand %p244_p8, %p238_p5 }
  0x14   :  { %248 = shalt.err (!%p245_p9)
}
  0x15   :  { %s277_s23 = smov 128   ;;  %s278_s24 = smov 8  }
  0x16   :  { %33 = dma.hbm_to_vmem [thread:$0]  %s325_s1, 256, %s28_s18, [#allocation6], %s277_s23, %s277_s23, %s278_s24  }
  0x17   :  { %269 = dma.done.wait [#allocation3], 128  }
  0x18   :  { %270 = vsyncadd [#allocation3], 4294967168 }
  0x19   :  { %271 = dma.done.wait [#allocation6], 256  }
  0x1a   :  { %272 = vsyncadd [#allocation6], 4294967040  ;;  %v279_v0 = vmov 0   ;;  %v202_v1 = vld [vmem:[#allocation5 + $0x4] ss:$8 sps:$4 sm:$0xff]   ;;  %v45_v3 = vld [vmem:[#allocation2] sm:$0xff]  ;;  %v147_v43 = vlaneseq }
  0x1b   :  { %95 = vmatprep.mubr.bf16.mxu0 %v279_v0  ;;  %v204_v2 = vld [vmem:[#allocation5] ss:$8 sps:$4 sm:$0xff]   ;;  %77 = vmatprep.subr.bf16.mxu0 %v202_v1  ;;  %v46_v4 = vpack.c.bf16 %v45_v3, %v45_v3  ;;  %vm59_vm0 = vcmask 130048   ;;  %vm110_vm1 = vcmask 261120   ;;  %v145_v48 = vld [vmem:[%s326_s2] sm:$0x3] }
  0x1c   :  { %78 = vmatpush1.bf16.msra.mxu0 %v204_v2  ;;  %v148_v46 = vshrl.u32 %v147_v43, 7  ;;  %v159_v49 = vld [vmem:[%s327_s3] sm:$0x3]  ;;  %s280_s29 = smov [#allocation7]  }
  0x1d   :  { %s183_s30 = sshll.u32 %s280_s29, 4  ;;  %s184_s30 = int_to_ptr.vmem [resolvable:$true] %s183_s30 }
  0x1e   :  { %v149_v47 = vsub.s32 0, %v148_v46  ;;  %v153_v51 = vsub.s32 1, %v148_v46  ;;  %s249_s2 = scalar_lea.vmem %s184_s30, 256  ;;  %p254_p11 = scmp.lt.s32.totalorder %s184_s30, %s184_s30 }
  0x1f   :  { %195 = vmatmul.mubr.msk.bf16.vlgmr.msra.gmra.mxu0 %vm59_vm0, %v46_v4  ;;  %p250_p10 = scmp.ne.s32.totalorder %s184_s30, %s249_s2  ;;  %p255_p12 = scmp.lt.s32.totalorder %s249_s2, %s249_s2 }
  0x20   :  { %v150_v50 = vrot.slane %v145_v48, %v149_v47  ;;  %v164_v54 = vrot.slane %v159_v49, %v149_v47  ;;  %v154_v56 = vrot.slane %v145_v48, %v153_v51  ;;  %v168_v59 = vrot.slane %v159_v49, %v153_v51 }
  0x21   :  { %p256_p13 = por %p255_p12, %p254_p11 }
  0x23   :  { %p257_p0 = pnand %p256_p13, %p250_p10 }
  0xdf   :  { %v97_v5 = vpop.f32.mrf.mxu0 }
  0xe0   :  { %v104_v6 = vrot.slane %v97_v5, 4 }
  0xe1   :  { %v99_v7 = vpop.f32.mrf.mxu0 }
  0xe2   :  { %v105_v8 = vadd.f32 %v104_v6, %v97_v5  ;;  %v111_v9 = vsel %vm110_vm1, %v99_v7, 0.0 }
  0xe3   :  { %v112_v10 = vrot.slane %v111_v9, 4  ;;  %v101_v11 = vpop.f32.mrf.mxu0 }
  0xe4   :  { %v106_v12 = vrot.slane %v105_v8, 2 }
  0xe5   :  { %v113_v13 = vadd.f32 %v112_v10, %v111_v9  ;;  %v102_v14 = vpop.f32.mrf.mxu0 }
  0xe6   :  { %v107_v15 = vadd.f32 %v106_v12, %v105_v8 }
  0xe7   :  { %v114_v16 = vrot.slane %v113_v13, 2 }
  0xe8   :  { %v108_v17 = vrot.slane %v107_v15, 1 }
  0xe9   :  { %v115_v18 = vadd.f32 %v114_v16, %v113_v13 }
  0xea   :  { %v109_v19 = vadd.f32 %v108_v17, %v107_v15 }
  0xeb   :  { %v116_v20 = vrot.slane %v115_v18, 1 }
  0xec   :  { %v118_v21 = vmul.f32 0.125, %v109_v19 }
  0xed   :  { %v117_v22 = vadd.f32 %v116_v20, %v115_v18 }
  0xee   :  { %v120_v23 = vsub.f32 %v97_v5, %v118_v21 }
  0xef   :  { %v119_v24 = vmul.f32 0.125, %v117_v22 }
  0xf0   :  { %v122_v25 = vmul.f32 %v120_v23, %v120_v23 }
  0xf1   :  { %v121_v26 = vsub.f32 %v99_v7, %v119_v24 }
  0xf2   :  { %v124_v27 = vrot.slane %v122_v25, 4 }
  0xf3   :  { %v123_v28 = vmul.f32 %v121_v26, %v121_v26 }
  0xf4   :  { %v125_v29 = vadd.f32 %v124_v27, %v122_v25 }
  0xf5   :  { %v130_v30 = vsel %vm110_vm1, %v123_v28, 0.0 }
  0xf6   :  { %v126_v31 = vrot.slane %v125_v29, 2  ;;  %v131_v32 = vrot.slane %v130_v30, 4 }
  0xf8   :  { %v127_v33 = vadd.f32 %v126_v31, %v125_v29  ;;  %v132_v34 = vadd.f32 %v131_v32, %v130_v30 }
  0xfa   :  { %v128_v35 = vrot.slane %v127_v33, 1  ;;  %v133_v36 = vrot.slane %v132_v34, 2 }
  0xfc   :  { %v129_v37 = vadd.f32 %v128_v35, %v127_v33  ;;  %v134_v38 = vadd.f32 %v133_v36, %v132_v34 }
  0xfe   :  { %v137_v39 = vmul.f32 0.125, %v129_v37  ;;  %v135_v40 = vrot.slane %v134_v38, 1 }
 0x100   :  { %v139_v41 = vadd.f32 1e-05, %v137_v39  ;;  %v136_v42 = vadd.f32 %v135_v40, %v134_v38 }
 0x102   :  { %205 = vrsqrt.f32 %v139_v41  ;;  %v138_v44 = vmul.f32 0.125, %v136_v42 }
 0x104   :  { %v140_v45 = vadd.f32 1e-05, %v138_v44 }
 0x106   :  { %207 = vrsqrt.f32 %v140_v45 }
 0x10f   :  { %v206_v52 = vpop.eup %205 }
 0x110   :  { %v143_v53 = vmul.f32 %v206_v52, %v120_v23 }
 0x112   :  { %v157_v55 = vmul.f32 %v150_v50, %v143_v53 }
 0x113   :  { %v208_v57 = vpop.eup %207 }
 0x114   :  { %v144_v58 = vmul.f32 %v208_v57, %v121_v26  ;;  %v171_v60 = vadd.f32 %v164_v54, %v157_v55 }
 0x116   :  { %v158_v61 = vmul.f32 %v154_v56, %v144_v58  ;;  %v173_v62 = vmax.f32 %v171_v60, 0.0 }
 0x118   :  { %v172_v63 = vadd.f32 %v168_v59, %v158_v61  ;;  %175 = vst [vmem:[#allocation7] sm:$0xff] %v173_v62 }
 0x11a   :  { %v174_v0 = vmax.f32 %v172_v63, 0.0 }
 0x11c   :  { %176 = vst.msk [vmem:[#allocation7 + $0x8] sm:$0xff] %vm110_vm1, %v174_v0 }
 0x11d   :  { %260 = shalt.err (!%p257_p0)
}
 0x11e   :  { %186 = dma.vmem_to_hbm [thread:$0]  %s184_s30, 256, %s328_s4, [#allocation4]  }
 0x11f   :  { %273 = dma.done.wait [#allocation4], 256  }
 0x120   :  { %274 = vsyncadd [#allocation4], 4294967040 }
 0x121   :  { %190 = vsyncpa [#allocation3], 1 }
 0x122   :  { %191 = vsyncpa [#allocation6], 1 }
 0x123   :  { %192 = vsyncpa [#allocation4], 1 }

</bundles_post_ra>
